<compile_context>
chip_gen: v7x
topology: tpu7x:2x2x1
jax: 0.10.0
libtpu: 0.0.40
codegen_flags: <defaults>
</compile_context>

<pallas_src>
import functools

import jax
import jax.numpy as jnp
from jax.experimental import pallas as pl
from jax.experimental.pallas import tpu as pltpu

EPS = 0.0001


def _quant_kernel(x_ref, o_ref, *, n_levels):
    # One block = (tile_rows, group_size). Per-row (per-group) statistics.
    x = x_ref[...].astype(jnp.float32)  # upcast so bf16/fp16 inputs match an fp32 reference
    xmax = jnp.max(x, axis=-1, keepdims=True)
    xmin = jnp.min(x, axis=-1, keepdims=True)
    # n_levels is a power of two, so multiplying by 1/n_levels is exact.
    scale = (xmax - xmin) * (1.0 / n_levels)
    # torch.where(scale == 0, eps, scale) — applying unconditionally is equivalent.
    scale = jnp.where(scale == 0.0, EPS, scale)
    # Exact (non-approx) reciprocal / zero-point on the tiny (tile_rows, 1) column:
    # cheap, and it replaces the full-tile iterative vdiv with a single vmul.
    inv_scale = 1.0 / scale
    zero_point = xmin / scale
    x_int = jnp.clip(jnp.round(x * inv_scale - zero_point), 0.0, float(n_levels - 1))
    o_ref[...] = ((x_int + zero_point) * scale).astype(o_ref.dtype)


class ActPGDynamicQuantizer:
    """JAX/Pallas port of the PyTorch ActPGDynamicQuantizer (forward pass only)."""

    def __init__(self, group_size, dim, n_bits=8):
        self.n_bits = n_bits
        self.n_levels = 2 ** n_bits
        self.group_size = group_size
        self.dim = dim
        self.name = "activation dynamic quantizer ———— per group"
        # The reshaped tensor is 2-D (groups, group_size); the reference module
        # reduces along `dim`, which in practice is the group axis (1 or -1).
        assert dim in (1, -1), "only per-group (last-axis) reduction is supported"

    def __call__(self, x):
        x_shape = x.shape
        total = 1
        for s in x_shape:
            total *= s
        assert total % self.group_size == 0

        num_groups = total // self.group_size
        x2d = x.reshape(num_groups, self.group_size)
        itemsize = jnp.dtype(x.dtype).itemsize
        row_bytes = self.group_size * itemsize
        # Minimum sublane tile per dtype: 8 (f32), 16 (bf16/fp16), 32 (int8/fp8).
        sublane_align = max(8, 32 // itemsize)

        # ---- VMEM-budgeted tiling (re-derived per generation; v7x has 64 MiB/TC) ----
        try:
            vmem_cap = pltpu.get_tpu_info().vmem_capacity_bytes
        except Exception:
            vmem_cap = 64 * 1024 * 1024  # conservative fallback = v7x per-TC VMEM
        vmem_limit = min(vmem_cap // 2, 48 * 1024 * 1024)
        # in + out arrays, double-buffered => 4 block-sized buffers; keep ~2x headroom.
        block_bytes_target = max(vmem_limit // 8, 512 * 1024)

        budget_rows = max(sublane_align, block_bytes_target // row_bytes)
        budget_rows -= budget_rows % sublane_align

        # Keep each block >= ~512 KiB so the fixed per-step overhead stays amortized.
        min_rows = max(sublane_align, (512 * 1024) // row_bytes)
        min_rows = -(-min_rows // sublane_align) * sublane_align

        # Aim for >= 8 grid steps on large inputs (pipelining + both v7x TensorCores).
        rows_for_8_steps = -(-num_groups // 8)
        rows_for_8_steps = -(-rows_for_8_steps // sublane_align) * sublane_align

        tile_rows = max(min_rows, min(budget_rows, rows_for_8_steps))
        if tile_rows >= num_groups:
            tile_rows = num_groups  # single full-extent block (always layout-legal)

        grid = (pl.cdiv(num_groups, tile_rows),)  # ragged last block is handled by Pallas

        # TODO(synk): for group_size < 128, pack k groups per row in the wrapper so the
        # output last dim is lane-dense (avoids masked vst.msk partial stores).

        kernel = functools.partial(_quant_kernel, n_levels=self.n_levels)

        cost = pl.CostEstimate(
            flops=10 * total,
            transcendentals=0,
            bytes_accessed=2 * total * itemsize,
        )

        out2d = pl.pallas_call(
            kernel,
            out_shape=jax.ShapeDtypeStruct((num_groups, self.group_size), x.dtype),
            grid_spec=pltpu.PrefetchScalarGridSpec(
                num_scalar_prefetch=0,
                grid=grid,
                in_specs=[pl.BlockSpec((tile_rows, self.group_size), lambda i: (i, 0))],
                out_specs=pl.BlockSpec((tile_rows, self.group_size), lambda i: (i, 0)),
            ),
            compiler_params=pltpu.CompilerParams(
                dimension_semantics=("parallel",),
                vmem_limit_bytes=vmem_limit,
            ),
            cost_estimate=cost,
        )(x2d)

        return out2d.reshape(x_shape)


def _reference_mirror(x, group_size, n_levels):
    """Pure-JAX mirror of the kernel math (reciprocal-multiply form)."""
    x_shape = x.shape
    total = x.size
    x2d = x.reshape(total // group_size, group_size).astype(jnp.float32)
    xmax = jnp.max(x2d, axis=-1, keepdims=True)
    xmin = jnp.min(x2d, axis=-1, keepdims=True)
    scale = (xmax - xmin) * (1.0 / n_levels)
    scale = jnp.where(scale == 0.0, EPS, scale)
    inv_scale = 1.0 / scale
    zp = xmin / scale
    x_int = jnp.clip(jnp.round(x2d * inv_scale - zp), 0.0, float(n_levels - 1))
    return ((x_int + zp) * scale).astype(x.dtype).reshape(x_shape)


def _reference_torch(x, group_size, n_levels):
    """Literal transcription of the PyTorch forward (divide form). Returns (out, scale)."""
    x_shape = x.shape
    total = x.size
    x2d = x.reshape(total // group_size, group_size).astype(jnp.float32)
    xmax = jnp.max(x2d, axis=-1, keepdims=True)
    xmin = jnp.min(x2d, axis=-1, keepdims=True)
    scale = (xmax - xmin) / n_levels
    scale = jnp.where(scale == 0.0, EPS, scale)
    zp = xmin / scale
    x_int = jnp.clip(jnp.round(x2d / scale - zp), 0.0, float(n_levels - 1))
    return ((x_int + zp) * scale).astype(x.dtype).reshape(x_shape), scale


if __name__ == "__main__":
    key = jax.random.PRNGKey(0)
    # NCHW-style activation: batch=2, channels=4, spatial=16x16 -> 2048 elements
    x = jax.random.normal(key, (2, 4, 16, 16), dtype=jnp.float32) * 3.0

    quantizer = ActPGDynamicQuantizer(group_size=128, dim=-1, n_bits=8)
    out = jax.block_until_ready(quantizer(x))

    assert out.shape == x.shape
    assert out.dtype == x.dtype
    assert not bool(jnp.any(jnp.isnan(out)))

    # 1) Strict check against a pure-JAX mirror of the kernel math: essentially every
    #    element must match to 1e-5 (tolerates at most a couple of round-to-nearest
    #    boundary flips from compiler fusion/rounding differences).
    ref_mirror = _reference_mirror(x, 128, 256)
    close = jnp.abs(out - ref_mirror) <= (1e-5 + 1e-5 * jnp.abs(ref_mirror))
    assert float(jnp.mean(close.astype(jnp.float32))) >= 0.999

    # 2) Semantic check against the literal PyTorch formula: no element may deviate by
    #    more than one quantization level, and the mean deviation must be tiny.
    ref_torch, scale_g = _reference_torch(x, 128, 256)
    err2d = jnp.abs(out.reshape(-1, 128) - ref_torch.reshape(-1, 128))
    assert bool(jnp.all(err2d <= scale_g * 1.001 + 1e-5))
    assert float(jnp.mean(err2d)) < 2e-4

    print("KERNEL_OK")
</pallas_src>

<mosaic_0001>
module attributes {stable_mosaic.version = 11 : i64} {
  func.func @_quant_kernel(%arg0: i32, %arg1: memref<16x128xf32, #tpu.memory_space<vmem>>, %arg2: memref<16x128xf32, #tpu.memory_space<vmem>>) attributes {dimension_semantics = [#tpu.dimension_semantics<parallel>], iteration_bounds = array<i64: 1>, scalar_prefetch = 0 : i64, scratch_operands = 0 : i64, tpu.core_type = #tpu.core_type<tc>, window_params = [{transform_indices = @transform_0, window_bounds = array<i64: 16, 128>}, {transform_indices = @transform_1, window_bounds = array<i64: 16, 128>}]} {
    %c0 = arith.constant 0 : index
    %c0_0 = arith.constant 0 : index
    %0 = vector.load %arg1[%c0, %c0_0] : memref<16x128xf32, #tpu.memory_space<vmem>>, vector<16x128xf32>
    %cst = arith.constant dense<0xFF800000> : vector<16xf32>
    %1 = vector.multi_reduction <maximumf>, %0, %cst [1] : vector<16x128xf32> to vector<16xf32>
    %2 = vector.shape_cast %1 : vector<16xf32> to vector<16x1xf32>
    %cst_1 = arith.constant dense<0x7F800000> : vector<16xf32>
    %3 = vector.multi_reduction <minimumf>, %0, %cst_1 [1] : vector<16x128xf32> to vector<16xf32>
    %4 = vector.shape_cast %3 : vector<16xf32> to vector<16x1xf32>
    %5 = arith.subf %2, %4 : vector<16x1xf32>
    %cst_2 = arith.constant 3.906250e-03 : f32
    %6 = vector.broadcast %cst_2 : f32 to vector<16x1xf32>
    %7 = arith.mulf %5, %6 : vector<16x1xf32>
    %cst_3 = arith.constant 0.000000e+00 : f32
    %8 = vector.broadcast %cst_3 : f32 to vector<16x1xf32>
    %9 = arith.cmpf oeq, %7, %8 : vector<16x1xf32>
    %cst_4 = arith.constant 9.99999974E-5 : f32
    %10 = vector.broadcast %cst_4 : f32 to vector<16x1xf32>
    %11 = arith.select %9, %10, %7 : vector<16x1xi1>, vector<16x1xf32>
    %cst_5 = arith.constant 1.000000e+00 : f32
    %12 = vector.broadcast %cst_5 : f32 to vector<16x1xf32>
    %13 = arith.divf %12, %11 : vector<16x1xf32>
    %14 = arith.divf %4, %11 : vector<16x1xf32>
    %15 = vector.broadcast %13 : vector<16x1xf32> to vector<16x128xf32>
    %16 = arith.mulf %0, %15 : vector<16x128xf32>
    %17 = vector.broadcast %14 : vector<16x1xf32> to vector<16x128xf32>
    %18 = arith.subf %16, %17 : vector<16x128xf32>
    %19 = math.roundeven %18 : vector<16x128xf32>
    %cst_6 = arith.constant 0.000000e+00 : f32
    %cst_7 = arith.constant 2.550000e+02 : f32
    %20 = vector.broadcast %cst_6 : f32 to vector<16x128xf32>
    %21 = arith.maximumf %20, %19 : vector<16x128xf32>
    %22 = vector.broadcast %cst_7 : f32 to vector<16x128xf32>
    %23 = arith.minimumf %22, %21 : vector<16x128xf32>
    %24 = vector.broadcast %14 : vector<16x1xf32> to vector<16x128xf32>
    %25 = arith.addf %23, %24 : vector<16x128xf32>
    %26 = vector.broadcast %11 : vector<16x1xf32> to vector<16x128xf32>
    %27 = arith.mulf %25, %26 : vector<16x128xf32>
    %c0_8 = arith.constant 0 : index
    %c0_9 = arith.constant 0 : index
    %28 = vector.load %arg2[%c0_8, %c0_9] : memref<16x128xf32, #tpu.memory_space<vmem>>, vector<16x128xf32>
    tpu.vector_store %arg2[%c0_8, %c0_9], %27 {strides = array<i32>} : memref<16x128xf32, #tpu.memory_space<vmem>>, vector<16x128xf32>,
    return
  }
  func.func @transform_0(%arg0: i32) -> (i32, i32) {
    %c0_i32 = arith.constant 0 : i32
    %c0_i32_0 = arith.constant 0 : i32
    return %arg0, %c0_i32 : i32, i32
  }
  func.func @transform_1(%arg0: i32) -> (i32, i32) {
    %c0_i32 = arith.constant 0 : i32
    %c0_i32_0 = arith.constant 0 : i32
    return %arg0, %c0_i32 : i32, i32
  }
}

</mosaic_0001>

<bundles_post_ra>
// kernel: tpu_custom_call.1
= control target key start
LH: loop header
LB: loop body
LE: loop exit
PB: predicated region body
PF: predicated region fallthrough
CT: control target
= control target key end

     0   :  { %6 = vsyncpa [#allocation3], 0  ;;  %s182_s0 = inlined_call_operand.hbm [shape: f32[16,128], index: 0, kind: input, shape index: {}]   ;;  %s183_s1 = inlined_call_operand.hbm [shape: f32[16,128], index: 1, kind: output, shape index: {}]  }
   0x1   :  { %7 = vsyncpa [#allocation4], 0  ;;  %s138_s6 = smov [#allocation2]   ;;  %s90_s10 = scalar_lea.hbm %s182_s0, 256 }
   0x2   :  { %s13_s7 = sshll.u32 %s138_s6, 4  ;;  %p91_p0 = scmp.ne.s32.totalorder %s182_s0, %s90_s10  ;;  %s14_s7 = int_to_ptr.vmem [resolvable:$true] %s13_s7 }
   0x3   :  { %p94_p1 = scmp.lt.u32.totalorder %s90_s10, %s182_s0 }
   0x5   :  { %p96_p2 = pnand %p94_p1, %p91_p0 }
   0x7   :  { %99 = shalt.err (!%p96_p2)
}
   0x8   :  { %s100_s15 = scalar_lea.vmem %s14_s7, 256  ;;  %p105_p4 = scmp.lt.s32.totalorder %s14_s7, %s14_s7 }
   0x9   :  { %p101_p3 = scmp.ne.s32.totalorder %s14_s7, %s100_s15  ;;  %p106_p5 = scmp.lt.s32.totalorder %s100_s15, %s100_s15 }
   0xb   :  { %p107_p6 = por %p106_p5, %p105_p4 }
   0xd   :  { %p108_p7 = pnand %p107_p6, %p101_p3 }
   0xf   :  { %111 = shalt.err (!%p108_p7)
}
  0x10   :  { %s139_s16 = smov 128   ;;  %s140_s17 = smov 8  }
  0x11   :  { %19 = dma.hbm_to_vmem [thread:$0]  %s182_s0, 256, %s14_s7, [#allocation3], %s139_s16, %s139_s16, %s140_s17  }
  0x12   :  { %134 = dma.done.wait [#allocation3], 256  }
  0x13   :  { %135 = vsyncadd [#allocation3], 4294967040  ;;  %v23_v0 = vld [vmem:[#allocation2] sm:$0xff]  ;;  %v24_v1 = vld [vmem:[#allocation2 + $0x8] sm:$0xff]  ;;  %s141_s0 = smov [#allocation5]  }
  0x14   :  { %29 = vmin.xlane.f32.xlu1 %v23_v0  ;;  %25 = vmax.xlane.f32.xlu0 %v23_v0  ;;  %s68_s20 = sshll.u32 %s141_s0, 4  ;;  %s69_s20 = int_to_ptr.vmem [resolvable:$true] %s68_s20 }
  0x15   :  { %s112_s21 = scalar_lea.vmem %s69_s20, 256  ;;  %p117_p9 = scmp.lt.s32.totalorder %s69_s20, %s69_s20 }
  0x16   :  { %p113_p8 = scmp.ne.s32.totalorder %s69_s20, %s112_s21  ;;  %p118_p10 = scmp.lt.s32.totalorder %s112_s21, %s112_s21 }
  0x18   :  { %31 = vmin.xlane.f32.xlu1 %v24_v1  ;;  %27 = vmax.xlane.f32.xlu0 %v24_v1  ;;  %p119_p11 = por %p118_p10, %p117_p9 }
  0x1a   :  { %p120_p12 = pnand %p119_p11, %p113_p8 }
  0xa1   :  { %v30_v2 = vpop.xlane.xlu1 %29  ;;  %v26_v3 = vpop.xlane.xlu0 %25 }
  0xa2   :  { %v33_v4 = vsub.f32 %v26_v3, %v30_v2 }
  0xa4   :  { %v35_v5 = vmul.f32 0.00390625, %v33_v4 }
  0xa5   :  { %v32_v6 = vpop.xlane.xlu1 %31  ;;  %v28_v7 = vpop.xlane.xlu0 %27 }
  0xa6   :  { %vm37_vm0 = vcmp.eq.f32.partialorder %v35_v5, 0.0  ;;  %v34_v8 = vsub.f32 %v28_v7, %v32_v6 }
  0xa7   :  { %v39_v9 = vsel %vm37_vm0, 0.0001, %v35_v5 }
  0xa8   :  { %86 = vrcp.f32 %v39_v9  ;;  %v36_v10 = vmul.f32 0.00390625, %v34_v8 }
  0xaa   :  { %vm38_vm1 = vcmp.eq.f32.partialorder %v36_v10, 0.0 }
  0xab   :  { %v40_v11 = vsel %vm38_vm1, 0.0001, %v36_v10 }
  0xac   :  { %88 = vrcp.f32 %v40_v11 }
  0xb2   :  { %v87_v12 = vpop.eup %86 }
  0xb3   :  { %v45_v13 = vmul.f32 %v87_v12, %v30_v2  ;;  %v47_v14 = vmul.f32 %v87_v12, %v23_v0 }
  0xb5   :  { %v49_v15 = vsub.f32 %v47_v14, %v45_v13 }
  0xb6   :  { %v89_v16 = vpop.eup %88 }
  0xb7   :  { %v80_v17 = vround.rtne.f32 %v49_v15  ;;  %v46_v18 = vmul.f32 %v89_v16, %v32_v6  ;;  %v48_v19 = vmul.f32 %v89_v16, %v24_v1 }
  0xb9   :  { %v53_v20 = vmax.f32 %v80_v17, 0.0  ;;  %v50_v21 = vsub.f32 %v48_v19, %v46_v18 }
  0xbb   :  { %v55_v22 = vmin.f32 %v53_v20, 255.0  ;;  %v81_v23 = vround.rtne.f32 %v50_v21 }
  0xbd   :  { %v57_v24 = vadd.f32 %v55_v22, %v45_v13  ;;  %v54_v25 = vmax.f32 %v81_v23, 0.0 }
  0xbf   :  { %v59_v26 = vmul.f32 %v57_v24, %v39_v9  ;;  %v56_v27 = vmin.f32 %v54_v25, 255.0 }
  0xc1   :  { %61 = vst [vmem:[#allocation5] sm:$0xff] %v59_v26  ;;  %v58_v28 = vadd.f32 %v56_v27, %v46_v18 }
  0xc3   :  { %v60_v29 = vmul.f32 %v58_v28, %v40_v11 }
  0xc5   :  { %62 = vst [vmem:[#allocation5 + $0x8] sm:$0xff] %v60_v29 }
  0xc6   :  { %123 = shalt.err (!%p120_p12)
}
  0xc7   :  { %s124_s24 = scalar_lea.hbm %s183_s1, 256 }
  0xc8   :  { %p125_p13 = scmp.ne.s32.totalorder %s183_s1, %s124_s24  ;;  %p128_p0 = scmp.lt.u32.totalorder %s124_s24, %s183_s1 }
  0xca   :  { %p130_p1 = pnand %p128_p0, %p125_p13 }
  0xcc   :  { %133 = shalt.err (!%p130_p1)
}
  0xcd   :  { %74 = dma.vmem_to_hbm [thread:$0]  %s69_s20, 256, %s183_s1, [#allocation4], %s139_s16, %s139_s16, %s140_s17  }
  0xce   :  { %136 = dma.done.wait [#allocation4], 256  }
  0xcf   :  { %137 = vsyncadd [#allocation4], 4294967040 }
  0xd0   :  { %78 = vsyncpa [#allocation3], 1 }
  0xd1   :  { %79 = vsyncpa [#allocation4], 1 }

</bundles_post_ra>
